<compile_context>
chip_gen: v7x
topology: tpu7x:2x2x1
jax: 0.10.0
libtpu: 0.0.40
codegen_flags: <defaults>
</compile_context>

<pallas_src>
import jax
import jax.numpy as jnp
from jax.experimental import pallas as pl
from jax.experimental.pallas import tpu as pltpu


def _round_up(x, m):
    return (x + m - 1) // m * m


def _vmem_limit_bytes():
    """Per-chip scoped-VMEM request with headroom (v7x only has 64 MiB)."""
    phys = 128 * 1024 * 1024
    try:
        phys = int(pltpu.get_tpu_info().vmem_capacity_bytes)
    except Exception:
        pass
    # 64 MiB on 128-MiB parts (v5e/v6e), 48 MiB on the 64-MiB v7x.
    return int(min(64 * 1024 * 1024, (phys * 3) // 4))


# ---------------------------------------------------------------------------
# Kernels
# ---------------------------------------------------------------------------
def _ntm_train_kernel(logits_ref, wt_ref, out_ref, probs_ref):
    # Grid is (batch tiles, output-class tiles).  The row softmax only
    # depends on the batch tile, so compute it once per batch tile (j == 0)
    # into VMEM scratch and reuse it across the j axis.
    @pl.when(pl.program_id(1) == 0)
    def _():
        x = logits_ref[...].astype(jnp.float32)
        x = x - jnp.max(x, axis=1, keepdims=True)
        ex = jnp.exp(x)
        inv = pl.reciprocal(jnp.sum(ex, axis=1, keepdims=True), approx=True)
        probs_ref[...] = (ex * inv).astype(probs_ref.dtype)

    # wt_ref holds (a tile of) softmax(W, axis=1).T, so this is the native
    # (lhs-last x rhs-2nd-last) MXU contraction with f32 accumulation.
    out_ref[...] = jnp.dot(
        probs_ref[...], wt_ref[...], preferred_element_type=jnp.float32
    ).astype(out_ref.dtype)


def _ntm_eval_kernel(logits_ref, out_ref):
    x = logits_ref[...].astype(jnp.float32)
    x = x - jnp.max(x, axis=1, keepdims=True)
    ex = jnp.exp(x)
    # Exact normalization: eval returns probabilities that sum to 1.
    out_ref[...] = (ex / jnp.sum(ex, axis=1, keepdims=True)).astype(out_ref.dtype)


# ---------------------------------------------------------------------------
# Wrapper
# ---------------------------------------------------------------------------
def noise_transition_matrix_forward(logits, ntm_param, training=True,
                                    block_b=None, use_bf16_matmul=True,
                                    core_parallel=False):
    """Pallas implementation of NoiseTransitionMatrix.forward.

    logits:    (B, C) float array
    ntm_param: (C, C) raw learnable transition matrix (out_features x in_features)
    """
    B, C = logits.shape
    out_dtype = logits.dtype
    in_item = jnp.dtype(logits.dtype).itemsize
    out_item = jnp.dtype(out_dtype).itemsize
    vmem_limit = _vmem_limit_bytes()

    w_dtype = jnp.bfloat16 if use_bf16_matmul else jnp.float32
    w_item = jnp.dtype(w_dtype).itemsize

    # ---- output-class tile: only tiled when (C, C) would blow the budget --
    w_budget = vmem_limit // 4
    if training and C > 128 and C * C * w_item > w_budget:
        tn = max(128, (w_budget // (C * w_item)) // 128 * 128)
        tn = min(tn, _round_up(C, 128))
    else:
        tn = C                      # full-extent last dim: no 128-padding
    n_j = pl.cdiv(C, tn)

    # ---- batch tile: as big as the VMEM budget allows ----------------------
    if block_b is None:
        per_row = 2 * C * in_item + 2 * tn * out_item   # double-buffered in/out
        resident_w = 0
        if training:
            per_row += C * w_item                        # probs scratch
            resident_w = C * tn * w_item * (2 if n_j > 1 else 1)
        budget = max(vmem_limit - resident_w, vmem_limit // 4)
        block_b = (budget // (2 * per_row)) // 8 * 8     # 2x safety headroom
        block_b = int(min(2048, max(8, block_b)))
    block_b = max(8, (block_b // 8) * 8)
    if B <= block_b:
        block_b = B                 # full extent: always a legal block shape
    n_b = pl.cdiv(B, block_b)

    batch_sem = pltpu.CORE_PARALLEL if core_parallel else "parallel"

    if training:
        # Grid-invariant preprocessing of the transition matrix: softmax over
        # the "in" axis, then transpose so the kernel contracts
        # probs(B, C_in) @ wt(C_in, C_out).  Tiny (C, C) work that fuses into
        # the caller's jit (no separate HBM round trips when jitted).
        wt = jax.nn.softmax(ntm_param.astype(jnp.float32), axis=1).T.astype(w_dtype)

        cost = pl.CostEstimate(
            flops=2 * B * C * C + 5 * B * C,
            transcendentals=B * C,
            bytes_accessed=int(B * C * (in_item + out_item) + C * C * w_item),
        )
        out = pl.pallas_call(
            _ntm_train_kernel,
            out_shape=jax.ShapeDtypeStruct((B, C), out_dtype),
            grid=(n_b, n_j),
            in_specs=[
                # Same block index across j -> logits tile is not re-fetched.
                pl.BlockSpec((block_b, C), lambda i, j: (i, 0)),
                pl.BlockSpec((C, tn), lambda i, j: (0, j)),
            ],
            out_specs=pl.BlockSpec((block_b, tn), lambda i, j: (i, j)),
            scratch_shapes=[pltpu.VMEM((block_b, C), w_dtype)],
            compiler_params=pltpu.CompilerParams(
                dimension_semantics=(batch_sem, "arbitrary"),
                vmem_limit_bytes=vmem_limit,
            ),
            cost_estimate=cost,
        )(logits, wt)
    else:
        cost = pl.CostEstimate(
            flops=5 * B * C,
            transcendentals=B * C,
            bytes_accessed=int(B * C * (in_item + out_item)),
        )
        out = pl.pallas_call(
            _ntm_eval_kernel,
            out_shape=jax.ShapeDtypeStruct((B, C), out_dtype),
            grid=(n_b,),
            in_specs=[pl.BlockSpec((block_b, C), lambda i: (i, 0))],
            out_specs=pl.BlockSpec((block_b, C), lambda i: (i, 0)),
            compiler_params=pltpu.CompilerParams(
                dimension_semantics=(batch_sem,),
                vmem_limit_bytes=vmem_limit,
            ),
            cost_estimate=cost,
        )(logits)

    return out


# ---------------------------------------------------------------------------
# Parameter init (matches the PyTorch __init__) and pure-JAX reference
# ---------------------------------------------------------------------------
def init_noise_transition_matrix(key, num_classes, initial_temperature=0.1):
    data = jnp.eye(num_classes, dtype=jnp.float32)
    data = data + jax.random.uniform(key, (num_classes, num_classes), jnp.float32) * 0.1
    return data / initial_temperature


def _reference_forward(logits, ntm_param, training=True):
    probs = jax.nn.softmax(logits, axis=1)
    if training:
        w_sm = jax.nn.softmax(ntm_param, axis=1)
        return probs @ w_sm.T
    return probs


# ---------------------------------------------------------------------------
if __name__ == "__main__":
    key = jax.random.PRNGKey(0)
    k_p1, k_x1, k_p2, k_x2 = jax.random.split(key, 4)

    # Whole forward (W softmax/transpose + pallas_call) in one jit so the
    # tiny preprocessing passes fuse with the kernel launch.
    fwd = jax.jit(
        noise_transition_matrix_forward,
        static_argnames=("training", "block_b", "use_bf16_matmul", "core_parallel"),
    )

    # Case 1: lane-aligned class count, several batch tiles.
    B1, C1 = 256, 128
    ntm1 = init_noise_transition_matrix(k_p1, C1)
    logits1 = jax.random.normal(k_x1, (B1, C1), jnp.float32)
    out_tr1 = fwd(logits1, ntm1, training=True, block_b=64)
    out_ev1 = fwd(logits1, ntm1, training=False, block_b=64)

    # Case 2: typical small, unaligned class count (exercises masked partial
    # lane stores and the partial last batch tile — no host-side padding).
    B2, C2 = 37, 10
    ntm2 = init_noise_transition_matrix(k_p2, C2)
    logits2 = jax.random.normal(k_x2, (B2, C2), jnp.float32)
    out_tr2 = fwd(logits2, ntm2, training=True)
    out_ev2 = fwd(logits2, ntm2, training=False)
    out_tr2_f32 = fwd(logits2, ntm2, training=True, use_bf16_matmul=False)

    jax.block_until_ready((out_tr1, out_ev1, out_tr2, out_ev2, out_tr2_f32))

    ref_tr1 = _reference_forward(logits1, ntm1, training=True)
    ref_ev1 = _reference_forward(logits1, ntm1, training=False)
    ref_tr2 = _reference_forward(logits2, ntm2, training=True)
    ref_ev2 = _reference_forward(logits2, ntm2, training=False)

    assert out_tr1.shape == (B1, C1) and out_ev1.shape == (B1, C1)
    assert out_tr2.shape == (B2, C2) and out_ev2.shape == (B2, C2)
    # Train path uses bf16 MXU operands (f32 accumulation) -> relaxed tolerance.
    assert jnp.allclose(out_tr1, ref_tr1, atol=2e-2, rtol=2e-2)
    assert jnp.allclose(out_tr2, ref_tr2, atol=2e-2, rtol=2e-2)
    # f32-matmul train path (approx reciprocal only) -> tighter tolerance.
    assert jnp.allclose(out_tr2_f32, ref_tr2, atol=2e-3, rtol=2e-3)
    # Eval path is f32 with exact normalization -> tight tolerance.
    assert jnp.allclose(out_ev1, ref_ev1, atol=1e-5, rtol=1e-5)
    assert jnp.allclose(out_ev2, ref_ev2, atol=1e-5, rtol=1e-5)

    print("KERNEL_OK")
</pallas_src>

<mosaic_0001>
module attributes {stable_mosaic.version = 11 : i64} {
  func.func @_ntm_train_kernel(%arg0: i32, %arg1: i32, %arg2: memref<64x128xf32, #tpu.memory_space<vmem>>, %arg3: memref<128x128xbf16, #tpu.memory_space<vmem>>, %arg4: memref<64x128xf32, #tpu.memory_space<vmem>>, %arg5: memref<64x128xbf16, #tpu.memory_space<vmem>>) attributes {dimension_semantics = [#tpu.dimension_semantics<parallel>, #tpu.dimension_semantics<arbitrary>], iteration_bounds = array<i64: 4, 1>, scalar_prefetch = 0 : i64, scratch_operands = 1 : i64, tpu.core_type = #tpu.core_type<tc>, window_params = [{transform_indices = @transform_0, window_bounds = array<i64: 64, 128>}, {transform_indices = @transform_1, window_bounds = array<i64: 128, 128>}, {transform_indices = @transform_2, window_bounds = array<i64: 64, 128>}]} {
    %c0_i32 = arith.constant 0 : i32
    %0 = arith.cmpi eq, %arg1, %c0_i32 : i32
    %1 = arith.extui %0 : i1 to i32
    %c0_i32_0 = arith.constant 0 : i32
    %2 = arith.cmpi ne, %1, %c0_i32_0 : i32
    scf.if %2 {
      %c0_6 = arith.constant 0 : index
      %c0_7 = arith.constant 0 : index
      %7 = vector.load %arg2[%c0_6, %c0_7] : memref<64x128xf32, #tpu.memory_space<vmem>>, vector<64x128xf32>
      %cst_8 = arith.constant dense<0xFF800000> : vector<64xf32>
      %8 = vector.multi_reduction <maximumf>, %7, %cst_8 [1] : vector<64x128xf32> to vector<64xf32>
      %9 = vector.shape_cast %8 : vector<64xf32> to vector<64x1xf32>
      %10 = vector.broadcast %9 : vector<64x1xf32> to vector<64x128xf32>
      %11 = arith.subf %7, %10 : vector<64x128xf32>
      %12 = math.exp %11 : vector<64x128xf32>
      %cst_9 = arith.constant dense<0.000000e+00> : vector<64xf32>
      %13 = vector.multi_reduction <add>, %12, %cst_9 [1] : vector<64x128xf32> to vector<64xf32>
      %14 = vector.shape_cast %13 : vector<64xf32> to vector<64x1xf32>
      %15 = tpu.reciprocal %14 {approx = true} : vector<64x1xf32> -> vector<64x1xf32>
      %16 = vector.broadcast %15 : vector<64x1xf32> to vector<64x128xf32>
      %17 = arith.mulf %12, %16 : vector<64x128xf32>
      %18 = arith.truncf %17 : vector<64x128xf32> to vector<64x128xbf16>
      %c0_10 = arith.constant 0 : index
      %c0_11 = arith.constant 0 : index
      %19 = vector.load %arg5[%c0_10, %c0_11] : memref<64x128xbf16, #tpu.memory_space<vmem>>, vector<64x128xbf16>
      tpu.vector_store %arg5[%c0_10, %c0_11], %18 {strides = array<i32>} : memref<64x128xbf16, #tpu.memory_space<vmem>>, vector<64x128xbf16>,
    } else {
    }
    %c0 = arith.constant 0 : index
    %c0_1 = arith.constant 0 : index
    %3 = vector.load %arg5[%c0, %c0_1] : memref<64x128xbf16, #tpu.memory_space<vmem>>, vector<64x128xbf16>
    %c0_2 = arith.constant 0 : index
    %c0_3 = arith.constant 0 : index
    %4 = vector.load %arg3[%c0_2, %c0_3] : memref<128x128xbf16, #tpu.memory_space<vmem>>, vector<128x128xbf16>
    %cst = arith.constant dense<0.000000e+00> : vector<64x128xf32>
    %5 = tpu.matmul %3, %4, %cst {dimension_numbers = #tpu.dot_dimension_numbers<[1], [0], [0], [1], [0, 0, 1, 1], [], []>} : vector<64x128xbf16>, vector<128x128xbf16>, vector<64x128xf32> -> vector<64x128xf32>
    %c0_4 = arith.constant 0 : index
    %c0_5 = arith.constant 0 : index
    %6 = vector.load %arg4[%c0_4, %c0_5] : memref<64x128xf32, #tpu.memory_space<vmem>>, vector<64x128xf32>
    tpu.vector_store %arg4[%c0_4, %c0_5], %5 {strides = array<i32>} : memref<64x128xf32, #tpu.memory_space<vmem>>, vector<64x128xf32>,
    return
  }
  func.func @transform_0(%arg0: i32, %arg1: i32) -> (i32, i32) {
    %c0_i32 = arith.constant 0 : i32
    %c0_i32_0 = arith.constant 0 : i32
    return %arg0, %c0_i32 : i32, i32
  }
  func.func @transform_1(%arg0: i32, %arg1: i32) -> (i32, i32) {
    %c0_i32 = arith.constant 0 : i32
    %c0_i32_0 = arith.constant 0 : i32
    return %c0_i32, %arg1 : i32, i32
  }
  func.func @transform_2(%arg0: i32, %arg1: i32) -> (i32, i32) {
    %c0_i32 = arith.constant 0 : i32
    return %arg0, %arg1 : i32, i32
  }
}

</mosaic_0001>

<bundles_post_ra>
// kernel: noise_transition_matrix_forward.1
= control target key start
LH: loop header
LB: loop body
LE: loop exit
PB: predicated region body
PF: predicated region fallthrough
CT: control target
= control target key end

     0   :  { %7 = vsyncpa [#allocation4], 0  ;;  %s1161_s0 = inlined_call_operand.hbm [shape: f32[256,128], index: 0, kind: input, shape index: {}]   ;;  %s1162_s1 = inlined_call_operand.hbm [shape: bf16[128,128], index: 1, kind: input, shape index: {}]   ;;  %s1163_s2 = inlined_call_operand.hbm [shape: f32[256,128], index: 2, kind: output, shape index: {}]  }
   0x1   :  { %9 = vsyncpa [#allocation4 + $0x1], 0 }
   0x2   :  { %10 = vsyncpa [#allocation7], 0 }
   0x3   :  { %11 = vsyncpa [#allocation5], 0 }
   0x4   :  { %13 = vsyncpa [#allocation5 + $0x1], 0  ;;  %s912_s9 = smov 0   ;;  %s914_s10 = smov 0  }
   0x5   :  { %s916_s11 = smov 0   ;;  %s918_s12 = smov 0  }
   0x6   :  { %s920_s13 = smov 0   ;;  %s922_s14 = smov 0  }
   0x7 LB: > { %s544_s15 = sadd.s32 4294967295, %s886_s14   ;;  %s545_s16 = sadd.s32 4294967294, %s886_s14   ;;  %s886_s14 = sphi %s922_s14, %s19_s14   ;;  %s882_s13 = sphi %s920_s13, %s1186_s13   ;;  %s878_s12 = sphi %s918_s12, %s1185_s12   ;;  %s874_s11 = sphi %s916_s11, %s1184_s11   ;;  %s870_s10 = sphi %s914_s10, %s1183_s10   ;;  %s866_s9 = sphi %s912_s9, %s1182_s9  }
   0x8   : > { %p51_p0 = scmp.ne.s32.totalorder %s870_s10, %s866_s9  ;;  %p946_p1 = scmp.eq.s32.totalorder %s544_s15, 0 }
   0x9   : > { %p950_p2 = scmp.eq.s32.totalorder %s544_s15, 3  ;;  %p109_p3 = scmp.eq.s32.totalorder %s545_s16, 3 }
   0xa   : > { %s1168_s17 = scalar_select %p946_p1, 1, 0 }
   0xb   : > { %s1169_s18 = scalar_select %p950_p2, 1, 0 }
   0xc   : > { %p956_p4 = por %p946_p1, %p51_p0  ;;  %p546_p5 = scmp.ge.s32.totalorder %s886_s14, 1 }
   0xd   : > { %p961_p6 = por %p109_p3, %p51_p0  ;;  %p116_p7 = scmp.lt.s32.totalorder %s886_s14, 5 }
   0xe   : > { %s1170_s19 = scalar_select %p956_p4, 1, 0 }
   0xf   : > { %s1171_s20 = scalar_select %p961_p6, 1, 0 }
  0x10   : > { %p966_p8 = pnand %p546_p5, %p116_p7  ;;  %s888_s22 = smov [#allocation6]  }
  0x11   : > { %s130_s23 = sshll.u32 %s888_s22, 4  ;;  %s31_s25 = sadd.s32 1, %s882_s13  ;;  %s131_s23 = int_to_ptr.vmem [resolvable:$true] %s130_s23 }
  0x12   : > { %s1172_s21 = scalar_select %p966_p8, 1, 0 }
  0x13   : > { %p631_p9 = pneg %p966_p8  ;;  %s742_s28 = scalar_lea.hbm %s1162_s1, 1024 }
  0x14   : > { %p743_p11 = scmp.ne.s32.totalorder %s1162_s1, %s742_s28  ;;  %p749_p3 = scmp.lt.u32.totalorder %s742_s28, %s1162_s1 }
  0x15   : > { %p974_p10 = pnand %p631_p9, %p946_p1 }
  0x17   : > { %p744_p12 = pneg %p974_p10 }
  0x19   : > { %p745_p13 = pnand %p744_p12, %p743_p11 }
  0x1b   : > { %p746_p0 = pneg %p745_p13 }
  0x1d   : > { %p751_p5 = pnand %p749_p3, %p746_p0 }
  0x1f   : > { %754 = shalt.err (!%p751_p5)
}
  0x20   : > { %s755_s5 = scalar_lea.vmem %s131_s23, 1024  ;;  %p763_p1 = scmp.lt.s32.totalorder %s131_s23, %s131_s23 }
  0x21   : > { %p756_p7 = scmp.ne.s32.totalorder %s131_s23, %s755_s5  ;;  %p764_p4 = scmp.lt.s32.totalorder %s755_s5, %s755_s5 }
  0x23   : > { %p758_p9 = pnand %p756_p7, %p744_p12  ;;  %p765_p8 = por %p764_p4, %p763_p1 }
  0x25   : > { %p759_p6 = pneg %p758_p9 }
  0x27   : > { %p766_p2 = pnand %p765_p8, %p759_p6 }
  0x29   : > { %769 = shalt.err (!%p766_p2)
}
  0x2a   : > { %s889_s6 = smov 64   ;;  %s890_s7 = smov 4  }
  0x2b   : > { %634 = dma.hbm_to_vmem [thread:$0]  (!%p974_p10), %s1162_s1, 1024, %s131_s23, [#allocation7], %s889_s6, %s889_s6, %s890_s7  }
  0x2c   : > { %p33_p1 = scmp.ge.s32.totalorder %s31_s25, 4  ;;  %s38_s16 = sadd.s32 1, %s874_s11 }
  0x2d   : > { %p45_p2 = scmp.ne.s32.totalorder %s874_s11, %s870_s10  ;;  %p46_p4 = scmp.eq.s32.totalorder %s886_s14, 0 }
  0x2e   : > { %s1188_s25 = smov (%p33_p1, %s31_s25), 0  ;;  %p1175_p8 = scmp.ne.s32.totalorder %s1169_s18, 0 }
  0x2f   : > { %p1001_p6 = por %p46_p4, %p45_p2  ;;  %s35_s24 = ssub.s32 %s882_s13, %s1188_s25 }
  0x30   : > { %p1007_p11 = por %p1175_p8, %p45_p2  ;;  %p644_p12 = scmp.lt.s32.totalorder %s886_s14, 4 }
  0x31   : > { %p36_p10 = scmp.eq.s32.totalorder %s35_s24, 0  ;;  %s144_s23 = sand.u32 1, %s874_s11  }
  0x32   : > { %s549_s27 = sshll.u32 %s144_s23, 6  ;;  %s569_s29 = sshll.u32 %s882_s13, 10 }
  0x33   : > { %s1016_s28 = scalar_select %p36_p10, %s874_s11, %s38_s16  }
  0x34   : > { %s1022_s4 = scalar_lea.hbm %s1161_s0, %s569_s29  ;;  %s148_s18 = scalar_lea.vmem [#allocation3], %s549_s27 }
  0x35   : > { %s155_s5 = sshll.u32 %s148_s18, 4  ;;  %p1028_p13 = pnand %p644_p12, %p1001_p6  ;;  %s1024_s5 = int_to_ptr.vmem [resolvable:$true] %s155_s5 }
  0x36   : > { %s1032_s7 = scalar_lea.sflag [#allocation4], %s144_s23  ;;  %s770_s8 = scalar_lea.hbm %s1022_s4, 1024 }
  0x37   : > { %p771_p0 = scmp.ne.s32.totalorder %s1022_s4, %s770_s8  ;;  %p772_p3 = pneg %p1028_p13 }
  0x38   : > { %s775_s22 = scalar_lea.hbm %s1161_s0, 4096  ;;  %p776_p9 = scmp.lt.u32.totalorder %s1022_s4, %s1161_s0 }
  0x39   : > { %p773_p5 = pnand %p772_p3, %p771_p0  ;;  %p777_p1 = scmp.lt.u32.totalorder %s775_s22, %s770_s8 }
  0x3a   : > { %p779_p4 = scmp.lt.u32.totalorder %s770_s8, %s1022_s4 }
  0x3b   : > { %p774_p7 = pneg %p773_p5  ;;  %p778_p2 = por %p777_p1, %p776_p9 }
  0x3d   : > { %p780_p6 = por %p779_p4, %p778_p2 }
  0x3f   : > { %p781_p8 = pnand %p780_p6, %p774_p7 }
  0x41   : > { %784 = shalt.err (!%p781_p8)
}
  0x42   : > { %s785_s23 = scalar_lea.vmem %s1024_s5, 1024  ;;  %s891_s29 = smov [#allocation3]  }
  0x43   : > { %p786_p12 = scmp.ne.s32.totalorder %s1024_s5, %s785_s23  ;;  %s790_s30 = sshll.u32 %s891_s29, 4  ;;  %s791_s30 = int_to_ptr.vmem [resolvable:$false] %s790_s30 }
  0x44   : > { %s792_s3 = scalar_lea.vmem %s791_s30, 2048  ;;  %p793_p5 = scmp.lt.s32.totalorder %s1024_s5, %s791_s30 }
  0x45   : > { %p788_p10 = pnand %p786_p12, %p772_p3  ;;  %p794_p9 = scmp.lt.s32.totalorder %s792_s3, %s785_s23 }
  0x47   : > { %p789_p0 = pneg %p788_p10  ;;  %p795_p1 = por %p794_p9, %p793_p5 }
  0x49   : > { %p796_p2 = pnand %p795_p1, %p789_p0 }
  0x4b   : > { %799 = shalt.err (!%p796_p2)
}
  0x4c   : > { %s892_s18 = smov 128   ;;  %s893_s8 = smov 8  }
  0x4d   : > { %638 = dma.hbm_to_vmem [thread:$0]  (!%p1028_p13), %s1022_s4, 1024, %s1024_s5, %s1032_s7, %s892_s18, %s892_s18, %s893_s8  }
  0x4e   : > { %p1178_p3 = scmp.ne.s32.totalorder %s1172_s21, 0 }
  0x4f   : > { %s1063_s15 = sand.u32 (!%p1178_p3), 1, %s870_s10   ;;  %p1179_p7 = scmp.ne.s32.totalorder (!%p1178_p3), %s1170_s19, 0 }
  0x50   : > { %167 = sbr.rel (%p1178_p3) target bundleno = 652 (0x28c), region = 28  ;;  %s553_s16 = sshll.u32 (!%p1178_p3), %s1063_s15, 6 }
  0x51   : > { %s170_s22 = scalar_lea.sflag (!%p1178_p3), [#allocation4], %s1063_s15  ;;  %s173_s24 = scalar_lea.vmem (!%p1178_p3), [#allocation3], %s553_s16 }
  0x57   : > { %853 = dma.done.wait (%p1179_p7), %s170_s22, 1024  }
  0x58   : > { %855 = vsyncadd (%p1179_p7), %s170_s22, 4294966272  ;;  %p1180_p13 = scmp.ne.s32.totalorder %s1168_s17, 0 }
  0x5a   : > { %857 = dma.done.wait (%p1180_p13), [#allocation7], 1024  }
  0x5b   : > { %859 = vsyncadd (%p1180_p13), [#allocation7], 4294966272  ;;  %v205_v0 = vld [vmem:[%s173_s24] sm:$0xff]  ;;  %v206_v2 = vld [vmem:[%s173_s24 + $0x8] sm:$0xff]  ;;  %s197_s17 = scalar_lea.vmem [#allocation8], %s553_s16  ;;  %s570_s21 = sshll.u32 %s878_s12, 10 }
  0x5c   : > { %v209_v1 = vld [vmem:[%s173_s24 + $0x20] sm:$0xff]  ;;  %213 = vmax.xlane.f32.xlu0 %v205_v0  ;;  %v210_v3 = vld [vmem:[%s173_s24 + $0x28] sm:$0xff]  ;;  %v207_v4 = vld [vmem:[%s173_s24 + $0x10] sm:$0xff]  ;;  %s449_s19 = sshll.u32 %s197_s17, 4  ;;  %s1113_s6 = scalar_lea.hbm %s1163_s2, %s570_s21  ;;  %s1108_s19 = int_to_ptr.vmem [resolvable:$true] %s449_s19 }
  0x5d   : > { %221 = vmax.xlane.f32.xlu1 %v209_v1  ;;  %v208_v5 = vld [vmem:[%s173_s24 + $0x18] sm:$0xff]  ;;  %v211_v6 = vld [vmem:[%s173_s24 + $0x30] sm:$0xff]  ;;  %v702_v8 = vld [vmem:[#allocation6] sm:$0xff]   ;;  %s435_s12 = scalar_lea.sflag [#allocation5], %s1063_s15  ;;  %s800_s7 = scalar_lea.vmem %s1108_s19, 1024 }
  0x5e   : > { %v212_v7 = vld [vmem:[%s173_s24 + $0x38] sm:$0xff]  ;;  %v703_v9 = vld [vmem:[#allocation6 + $0x8] sm:$0xff]   ;;  %583 = vmatprep.subr.bf16.mxu0 %v702_v8  ;;  %607 = vmatprep.subr.bf16.mxu1 %v702_v8  ;;  %v704_v42 = vld [vmem:[#allocation6 + $0x10] sm:$0xff]   ;;  %p801_p4 = scmp.ne.s32.totalorder %s1108_s19, %s800_s7  ;;  %s894_s27 = smov [#allocation8]  }
  0x5f   : > { %584 = vmatpush3.bf16.msra.mxu0 %v702_v8  ;;  %615 = vmatpush3.bf16.msra.mxu1 %v702_v8  ;;  %v705_v43 = vld [vmem:[#allocation6 + $0x18] sm:$0xff]   ;;  %v706_v44 = vld [vmem:[#allocation6 + $0x20] sm:$0xff]   ;;  %v707_v45 = vld [vmem:[#allocation6 + $0x28] sm:$0xff]   ;;  %s804_s23 = sshll.u32 %s894_s27, 4  ;;  %s805_s23 = int_to_ptr.vmem [resolvable:$false] %s804_s23 }
  0x60   : > { %215 = vmax.xlane.f32.xlu0 %v206_v2  ;;  %585 = vmatprep.subr.bf16.mxu0 %v703_v9  ;;  %v708_v46 = vld [vmem:[#allocation6 + $0x30] sm:$0xff]   ;;  %v709_v47 = vld [vmem:[#allocation6 + $0x38] sm:$0xff]   ;;  %p802_p6 = pnand %p801_p4, %p1007_p11  ;;  %s806_s29 = scalar_lea.vmem %s805_s23, 2048 }
  0x61   : > { %223 = vmax.xlane.f32.xlu1 %v210_v3  ;;  %608 = vmatprep.subr.bf16.mxu1 %v703_v9  ;;  %p807_p12 = scmp.lt.s32.totalorder %s1108_s19, %s805_s23  ;;  %p808_p10 = scmp.lt.s32.totalorder %s806_s29, %s800_s7 }
  0x62   : > { %p803_p8 = pneg %p802_p6 }
  0x63   : > { %586 = vmatpush3.bf16.msra.mxu0 %v703_v9  ;;  %616 = vmatpush3.bf16.msra.mxu1 %v703_v9  ;;  %p809_p0 = por %p808_p10, %p807_p12 }
  0x64   : > { %217 = vmax.xlane.f32.xlu0 %v207_v4  ;;  %587 = vmatprep.subr.bf16.mxu0 %v704_v42 }
  0x65   : > { %219 = vmax.xlane.f32.xlu1 %v208_v5  ;;  %609 = vmatprep.subr.bf16.mxu1 %v704_v42  ;;  %p810_p5 = pnand %p809_p0, %p803_p8 }
  0x67   : > { %588 = vmatpush3.bf16.msra.mxu0 %v704_v42  ;;  %617 = vmatpush3.bf16.msra.mxu1 %v704_v42 }
  0x68   : > { %225 = vmax.xlane.f32.xlu0 %v211_v6  ;;  %589 = vmatprep.subr.bf16.mxu0 %v705_v43 }
  0x69   : > { %227 = vmax.xlane.f32.xlu1 %v212_v7  ;;  %610 = vmatprep.subr.bf16.mxu1 %v705_v43 }
  0x6b   : > { %590 = vmatpush3.bf16.msra.mxu0 %v705_v43  ;;  %618 = vmatpush3.bf16.msra.mxu1 %v705_v43 }
  0x6c   : > { %591 = vmatprep.subr.bf16.mxu0 %v706_v44  ;;  %611 = vmatprep.subr.bf16.mxu1 %v706_v44 }
  0x6f   : > { %592 = vmatpush3.bf16.msra.mxu0 %v706_v44  ;;  %619 = vmatpush3.bf16.msra.mxu1 %v706_v44 }
  0x70   : > { %593 = vmatprep.subr.bf16.mxu0 %v707_v45  ;;  %612 = vmatprep.subr.bf16.mxu1 %v707_v45 }
  0x73   : > { %594 = vmatpush3.bf16.msra.mxu0 %v707_v45  ;;  %620 = vmatpush3.bf16.msra.mxu1 %v707_v45 }
  0x74   : > { %595 = vmatprep.subr.bf16.mxu0 %v708_v46  ;;  %613 = vmatprep.subr.bf16.mxu1 %v708_v46 }
  0x77   : > { %596 = vmatpush3.bf16.msra.mxu0 %v708_v46  ;;  %621 = vmatpush3.bf16.msra.mxu1 %v708_v46 }
  0x78   : > { %597 = vmatprep.subr.bf16.mxu0 %v709_v47  ;;  %614 = vmatprep.subr.bf16.mxu1 %v709_v47 }
  0x7b   : > { %598 = vmatpush3.bf16.msra.mxu0 %v709_v47  ;;  %622 = vmatpush3.bf16.msra.mxu1 %v709_v47 }
  0xe9   : > { %v214_v10 = vpop.xlane.xlu0 %213 }
  0xea   : > { %v222_v11 = vpop.xlane.xlu1 %221  ;;  %v229_v12 = vsub.f32 %v205_v0, %v214_v10 }
  0xeb   : > { %v233_v13 = vsub.f32 %v209_v1, %v222_v11 }
  0xec   : > { %v237_v14 = vmul.f32 1.442695, %v229_v12 }
  0xed   : > { %v245_v15 = vmul.f32 1.442695, %v233_v13  ;;  %v216_v16 = vpop.xlane.xlu0 %215 }
  0xee   : > { %v224_v17 = vpop.xlane.xlu1 %223  ;;  %710 = vpow2.f32 %v237_v14  ;;  %v230_v18 = vsub.f32 %v206_v2, %v216_v16 }
  0xef   : > { %v234_v19 = vsub.f32 %v210_v3, %v224_v17  ;;  %712 = vpow2.f32 %v245_v15 }
  0xf0   : > { %v239_v20 = vmul.f32 1.442695, %v230_v18 }
  0xf1   : > { %v247_v21 = vmul.f32 1.442695, %v234_v19  ;;  %v218_v22 = vpop.xlane.xlu0 %217 }
  0xf2   : > { %v220_v23 = vpop.xlane.xlu1 %219  ;;  %714 = vpow2.f32 %v239_v20  ;;  %v231_v24 = vsub.f32 %v207_v4, %v218_v22 }
  0xf3   : > { %v232_v25 = vsub.f32 %v208_v5, %v220_v23  ;;  %716 = vpow2.f32 %v247_v21 }
  0xf4   : > { %v241_v26 = vmul.f32 1.442695, %v231_v24 }
  0xf5   : > { %v243_v27 = vmul.f32 1.442695, %v232_v25  ;;  %v226_v28 = vpop.xlane.xlu0 %225 }
  0xf6   : > { %v228_v29 = vpop.xlane.xlu1 %227  ;;  %718 = vpow2.f32 %v241_v26  ;;  %v235_v30 = vsub.f32 %v211_v6, %v226_v28 }
  0xf7   : > { %v236_v31 = vsub.f32 %v212_v7, %v228_v29  ;;  %720 = vpow2.f32 %v243_v27 }
  0xf8   : > { %v1077_v32 = vpop.eup %710  ;;  %v249_v33 = vmul.f32 1.442695, %v235_v30 }
  0xf9   : > { %v251_v34 = vmul.f32 1.442695, %v236_v31  ;;  %253 = vadd.xlane.f32.xlu0 %v1077_v32  ;;  %v1080_v35 = vpop.eup %712 }
  0xfa   : > { %722 = vpow2.f32 %v249_v33 }
  0xfb   : > { %724 = vpow2.f32 %v251_v34 }
  0xfc   : > { %v715_v36 = vpop.eup %714 }
  0xfd   : > { %261 = vadd.xlane.f32.xlu0 %v1080_v35  ;;  %255 = vadd.xlane.f32.xlu1 %v715_v36  ;;  %v1083_v37 = vpop.eup %716 }
 0x100   : > { %v1085_v38 = vpop.eup %718 }
 0x101   : > { %263 = vadd.xlane.f32.xlu1 %v1083_v37  ;;  %257 = vadd.xlane.f32.xlu0 %v1085_v38  ;;  %v1089_v39 = vpop.eup %720 }
 0x104   : > { %v1091_v40 = vpop.eup %722 }
 0x105   : > { %259 = vadd.xlane.f32.xlu1 %v1089_v39  ;;  %265 = vadd.xlane.f32.xlu0 %v1091_v40  ;;  %v1095_v41 = vpop.eup %724 }
 0x109   : > { %267 = vadd.xlane.f32.xlu1 %v1095_v41 }
 0x186   : > { %v254_v48 = vpop.xlane.xlu0 %253 }
 0x187   : > { %726 = vrcp.f32 %v254_v48 }
 0x18a   : > { %v256_v49 = vpop.xlane.xlu1 %255  ;;  %v262_v50 = vpop.xlane.xlu0 %261 }
 0x18b   : > { %728 = vrcp.f32 %v256_v49 }
 0x18c   : > { %730 = vrcp.f32 %v262_v50 }
 0x18e   : > { %v264_v51 = vpop.xlane.xlu1 %263  ;;  %v258_v52 = vpop.xlane.xlu0 %257 }
 0x18f   : > { %732 = vrcp.f32 %v264_v51 }
 0x190   : > { %734 = vrcp.f32 %v258_v52 }
 0x191   : > { %v727_v55 = vpop.eup %726 }
 0x192   : > { %v260_v53 = vpop.xlane.xlu1 %259  ;;  %v266_v54 = vpop.xlane.xlu0 %265  ;;  %v277_v58 = vmul.f32 %v727_v55, %v1077_v32 }
 0x193   : > { %736 = vrcp.f32 %v260_v53 }
 0x194   : > { %738 = vrcp.f32 %v266_v54 }
 0x195   : > { %v729_v56 = vpop.eup %728 }
 0x196   : > { %v268_v57 = vpop.xlane.xlu1 %267  ;;  %v278_v59 = vmul.f32 %v729_v56, %v715_v36  ;;  %v731_v60 = vpop.eup %730 }
 0x197   : > { %740 = vrcp.f32 %v268_v57  ;;  %v281_v63 = vmul.f32 %v731_v60, %v1080_v35 }
 0x198   : > { %v285_v61 = vpack.c.bf16 %v278_v59, %v277_v58 }
 0x199   : > { %v733_v62 = vpop.eup %732 }
 0x19a   : > { %599 = vmatprep.mubr.bf16.mxu0 %v285_v61  ;;  %v282_v0 = vmul.f32 %v733_v62, %v1083_v37  ;;  %v735_v1 = vpop.eup %734 }
 0x19b   : > { %v279_v4 = vmul.f32 %v735_v1, %v1085_v38 }
 0x19c   : > { %v287_v2 = vpack.c.bf16 %v282_v0, %v281_v63 }
 0x19d   : > { %v737_v3 = vpop.eup %736 }
 0x19e   : > { %603 = vmatprep.mubr.bf16.mxu1 %v287_v2  ;;  %v280_v5 = vmul.f32 %v737_v3, %v1089_v39  ;;  %v739_v6 = vpop.eup %738 }
 0x19f   : > { %v283_v9 = vmul.f32 %v739_v6, %v1091_v40 }
 0x1a0   : > { %v286_v7 = vpack.c.bf16 %v280_v5, %v279_v4 }
 0x1a1   : > { %v741_v8 = vpop.eup %740 }
 0x1a2   : > { %600 = vmatmul.mubr.bf16.vlgmr.msra.gmra.mrb[0].mxu0 %v286_v7  ;;  %v284_v10 = vmul.f32 %v741_v8, %v1095_v41 }
 0x1a4   : > { %v288_v11 = vpack.c.bf16 %v284_v10, %v283_v9 }
 0x1a6   : > { %604 = vmatmul.mubr.bf16.vlgmr.msra.gmra.mrb[0].mxu1 %v288_v11 }
 0x275   : > { %v601_v12 = vpop.f32.mrb[0].mxu0 }
 0x276   : > { %428 = vst [vmem:[%s197_s17 + $0x10] sm:$0xff] %v601_v12  ;;  %v395_v13 = vpop.f32.mrb[1].mxu0 }
 0x277   : > { %426 = vst [vmem:[%s197_s17] sm:$0xff] %v395_v13  ;;  %v602_v14 = vpop.f32.mrb[2].mxu0 }
 0x278   : > { %429 = vst [vmem:[%s197_s17 + $0x18] sm:$0xff] %v602_v14  ;;  %v398_v15 = vpop.f32.mrb[3].mxu0 }
 0x279   : > { %427 = vst [vmem:[%s197_s17 + $0x8] sm:$0xff] %v398_v15  ;;  %v605_v16 = vpop.f32.mrb[0].mxu1 }
 0x27a   : > { %432 = vst [vmem:[%s197_s17 + $0x30] sm:$0xff] %v605_v16  ;;  %v411_v17 = vpop.f32.mrb[1].mxu1 }
 0x27b   : > { %430 = vst [vmem:[%s197_s17 + $0x20] sm:$0xff] %v411_v17  ;;  %v606_v18 = vpop.f32.mrb[2].mxu1 }
 0x27c   : > { %433 = vst [vmem:[%s197_s17 + $0x38] sm:$0xff] %v606_v18  ;;  %v414_v19 = vpop.f32.mrb[3].mxu1 }
 0x27d   : > { %431 = vst [vmem:[%s197_s17 + $0x28] sm:$0xff] %v414_v19 }
 0x27e   : > { %813 = shalt.err (!%p810_p5)
}
 0x27f   : > { %s814_s30 = scalar_lea.hbm %s1113_s6, 1024  ;;  %s818_s8 = scalar_lea.hbm %s1163_s2, 4096 }
 0x280   : > { %p815_p9 = scmp.ne.s32.totalorder %s1113_s6, %s814_s30  ;;  %p819_p3 = scmp.lt.u32.totalorder %s1113_s6, %s1163_s2 }
 0x281   : > { %p820_p7 = scmp.lt.u32.totalorder %s818_s8, %s814_s30  ;;  %p822_p4 = scmp.lt.u32.totalorder %s814_s30, %s1113_s6 }
 0x282   : > { %p816_p1 = pnand %p815_p9, %p1007_p11 }
 0x283   : > { %p821_p13 = por %p820_p7, %p819_p3 }
 0x284   : > { %p817_p2 = pneg %p816_p1 }
 0x285   : > { %p823_p6 = por %p822_p4, %p821_p13 }
 0x287   : > { %p824_p8 = pnand %p823_p6, %p817_p2 }
 0x289   : > { %827 = shalt.err (!%p824_p8)
}
 0x28a   : > { %s895_s24 = smov 128   ;;  %s896_s17 = smov 8  }
 0x28b   : > { %629 = dma.vmem_to_hbm [thread:$0]  (%p1007_p11), %s1108_s19, 1024, %s1113_s6, %s435_s12, %s895_s24, %s895_s24, %s896_s17  }
 0x28c PF: > { %p646_p12 = scmp.ge.s32.totalorder %s886_s14, 2  ;;  %s464_s21 = sand.u32 1, %s866_s9  }
 0x28d   : > { %p1181_p10 = scmp.ne.s32.totalorder %s1171_s20, 0  ;;  %s465_s4 = scalar_lea.sflag [#allocation5], %s464_s21 }
 0x28f   : > { %p640_p0 = pnand %p646_p12, %p1181_p10 }
 0x291   : > { %861 = dma.done.wait (!%p640_p0), %s465_s4, 1024  }
 0x292   : > { %863 = vsyncadd (!%p640_p0), %s465_s4, 4294966272  ;;  %s19_s14 = sadd.s32 1, %s886_s14   ;;  %s1182_s9 = smov %s870_s10 }
 0x293   : > { %p16_p5 = scmp.ge.s32.totalorder %s19_s14, 6   ;;  %s1183_s10 = smov %s874_s11 }
 0x294   : > { %s1184_s11 = smov %s1016_s28  ;;  %s1185_s12 = smov %s882_s13 }
 0x295   : > { %s1186_s13 = smov %s1188_s25  ;;  %18 = sbr.rel (!%p16_p5) target bundleno = 7 (0x7), region = 82 }
 0x29c   :  { %470 = vsyncpa [#allocation4], 1 }
 0x29d   :  { %472 = vsyncpa [#allocation4 + $0x1], 1 }
 0x29e   :  { %473 = vsyncpa [#allocation7], 1 }
 0x29f   :  { %474 = vsyncpa [#allocation5], 1 }
 0x2a0   :  { %476 = vsyncpa [#allocation5 + $0x1], 1 }

</bundles_post_ra>
